<compile_context>
chip_gen: v5e
topology: v5e:2x2
jax: 0.10.0
libtpu: 0.0.40
codegen_flags: <defaults>
</compile_context>

<pallas_src>
import jax
import jax.numpy as jnp
from jax.experimental import pallas as pl
from jax.experimental.pallas import tpu as pltpu


def _copy_kernel(x_ref, o_ref):
    # Identity copy of the current (tile_rows, lane) block.
    o_ref[...] = x_ref[...]


def squeeze_view(x: jax.Array) -> jax.Array:
    """Zero-cost path: squeeze is metadata-only; let XLA alias the buffer."""
    return x.reshape(tuple(d for d in x.shape if d != 1))


def _sublane_multiple(dtype) -> int:
    """Packed-sublane row multiple: 8 for 32-bit, 16 for 16-bit, 32 for 8-bit."""
    itemsize = jnp.dtype(dtype).itemsize
    if itemsize >= 4:
        return 8
    return 8 * (4 // itemsize)


def _tpu_vmem_bytes() -> int:
    """VMEM capacity of the current TPU; conservative default if unavailable."""
    try:
        return int(pltpu.get_tpu_info().vmem_capacity_bytes)
    except Exception:
        return 64 << 20  # v7x per-TensorCore VMEM (smallest of the targets)


def _choose_lane(size: int, sub: int, max_lane: int = 4096):
    """Largest multiple-of-128 lane width dividing `size`, preferring a
    sublane-aligned row count.  None if no such divisor exists."""
    cands = [L for L in range(128, min(size, max_lane) + 1, 128) if size % L == 0]
    if not cands:
        return None
    aligned = [L for L in cands if (size // L) % sub == 0]
    return max(aligned) if aligned else max(cands)


def squeeze_pallas(x: jax.Array) -> jax.Array:
    """Pallas-backed torch.Tensor.squeeze(): materialized identity copy."""
    squeezed_shape = tuple(d for d in x.shape if d != 1)
    size = x.size
    if size == 0:
        # Degenerate empty tensor: nothing to copy.
        return jnp.zeros(squeezed_shape, dtype=x.dtype)

    itemsize = jnp.dtype(x.dtype).itemsize
    sub = _sublane_multiple(x.dtype)

    lane = _choose_lane(size, sub)
    padded = False
    if lane is None:
        # Element count has no multiple-of-128 divisor: pad the flat vector up
        # to a full (rows, 128) slab, copy tiled, slice the valid prefix out.
        # Keeps every block bounded & pipelined even for large odd sizes.
        lane = 128
        rows = pl.cdiv(size, lane)
        pad = rows * lane - size
        flat = jnp.pad(x.reshape(-1), (0, pad)).reshape(rows, lane)
        padded = pad > 0
    else:
        rows = size // lane
        flat = x.reshape(rows, lane)

    # Per-generation tile budget: ~8 MiB blocks on v6e/v7x-class VMEM, scaled
    # down when VMEM is small.  4 pipelined buffers (2 in + 2 out) stay under
    # the explicit vmem_limit_bytes below on every generation.
    vmem_cap = _tpu_vmem_bytes()
    budget_bytes = max(512 * 1024, min(8 << 20, vmem_cap // 8))
    vmem_limit = int(min(vmem_cap * 3 // 4, 96 << 20))

    row_bytes = lane * itemsize
    tile_rows = min(rows, max(1, budget_bytes // row_bytes))
    if tile_rows >= sub:
        tile_rows -= tile_rows % sub  # dtype-aware packed-sublane alignment

    # Keep >=2 grid steps when possible so both v7x TensorCores get work.
    if tile_rows >= rows and rows >= 2 * sub:
        tile_rows = pl.cdiv(pl.cdiv(rows, 2), sub) * sub

    grid = (pl.cdiv(rows, tile_rows),)

    out_flat = pl.pallas_call(
        _copy_kernel,
        out_shape=jax.ShapeDtypeStruct((rows, lane), x.dtype),
        grid=grid,
        in_specs=[pl.BlockSpec((tile_rows, lane), lambda i: (i, 0))],
        out_specs=pl.BlockSpec((tile_rows, lane), lambda i: (i, 0)),
        # Donate the flattened input buffer to the output: no second HBM slab
        # (fully effective when the caller's buffer is donatable, e.g. under
        # jax.jit with donate_argnums).
        input_output_aliases={0: 0},
        compiler_params=pltpu.CompilerParams(
            # Independent copy tiles -> shard across TensorCores (v7x megacore).
            dimension_semantics=("parallel",),
            vmem_limit_bytes=vmem_limit,
        ),
        # Pure memory traffic: zero flops, read + write of the whole slab.
        cost_estimate=pl.CostEstimate(
            flops=0,
            transcendentals=0,
            bytes_accessed=2 * rows * lane * itemsize,
        ),
    )(flat)

    if padded:
        return out_flat.reshape(-1)[:size].reshape(squeezed_shape)
    return out_flat.reshape(squeezed_shape)


def squeeze(x: jax.Array, *, materialize: bool = False) -> jax.Array:
    """Forward pass of the PyTorch `Squeeze` module.

    Squeeze is metadata-only, so the default is the zero-cost view (no HBM
    traffic at all).  `materialize=True` forces the Pallas identity-copy
    kernel (e.g. when a fresh compact buffer is explicitly required); tiny
    tensors (<1 MiB) still take the view path since the fixed pallas_call
    launch cost exceeds their total traffic.
    """
    if not materialize:
        return squeeze_view(x)
    if x.size * jnp.dtype(x.dtype).itemsize < (1 << 20):
        return squeeze_view(x)
    return squeeze_pallas(x)


if __name__ == "__main__":
    key = jax.random.PRNGKey(0)

    # Primary test: several size-1 dims, f32, 128-divisible element count.
    x = jax.random.normal(key, (2, 1, 4, 1, 16, 16), dtype=jnp.float32)
    y = squeeze_pallas(x)          # force the Pallas kernel path
    jax.block_until_ready(y)
    ref = jnp.squeeze(x)           # same semantics as torch .squeeze()
    assert y.shape == ref.shape == (2, 4, 16, 16), (y.shape, ref.shape)
    assert y.dtype == ref.dtype
    assert bool(jnp.array_equal(y, ref))

    # Secondary test: bf16 (packed sublanes) + element count (105) not
    # divisible by 128 -> exercises the padded fallback path.
    x2 = jax.random.normal(jax.random.PRNGKey(1), (1, 3, 1, 5, 7), dtype=jnp.bfloat16)
    y2 = squeeze_pallas(x2)
    jax.block_until_ready(y2)
    ref2 = jnp.squeeze(x2)
    assert y2.shape == ref2.shape == (3, 5, 7), (y2.shape, ref2.shape)
    assert y2.dtype == ref2.dtype
    assert bool(jnp.array_equal(y2, ref2))

    # Dispatch / zero-cost metadata paths agree too.
    assert bool(jnp.array_equal(squeeze(x), ref))
    assert bool(jnp.array_equal(squeeze_view(x), ref))

    print("KERNEL_OK")
</pallas_src>

<mosaic_0001>
module attributes {stable_mosaic.version = 11 : i64} {
  func.func @_copy_kernel(%arg0: i32, %arg1: memref<8x256xf32, #tpu.memory_space<vmem>>, %arg2: memref<8x256xf32, #tpu.memory_space<vmem>>) attributes {dimension_semantics = [#tpu.dimension_semantics<parallel>], iteration_bounds = array<i64: 1>, scalar_prefetch = 0 : i64, scratch_operands = 0 : i64, tpu.core_type = #tpu.core_type<tc>, window_params = [{transform_indices = @transform_0, window_bounds = array<i64: 8, 256>}, {transform_indices = @transform_1, window_bounds = array<i64: 8, 256>}]} {
    %c0 = arith.constant 0 : index
    %c0_0 = arith.constant 0 : index
    %0 = vector.load %arg1[%c0, %c0_0] : memref<8x256xf32, #tpu.memory_space<vmem>>, vector<8x256xf32>
    %c0_1 = arith.constant 0 : index
    %c0_2 = arith.constant 0 : index
    %1 = vector.load %arg2[%c0_1, %c0_2] : memref<8x256xf32, #tpu.memory_space<vmem>>, vector<8x256xf32>
    tpu.vector_store %arg2[%c0_1, %c0_2], %0 {strides = array<i32>} : memref<8x256xf32, #tpu.memory_space<vmem>>, vector<8x256xf32>,
    return
  }
  func.func @transform_0(%arg0: i32) -> (i32, i32) {
    %c0_i32 = arith.constant 0 : i32
    %c0_i32_0 = arith.constant 0 : i32
    return %arg0, %c0_i32 : i32, i32
  }
  func.func @transform_1(%arg0: i32) -> (i32, i32) {
    %c0_i32 = arith.constant 0 : i32
    %c0_i32_0 = arith.constant 0 : i32
    return %arg0, %c0_i32 : i32, i32
  }
}

</mosaic_0001>

<bundles_post_ra>
// kernel: tpu_custom_call.1
= control target key start
LH: loop header
LB: loop body
LE: loop exit
PB: predicated region body
PF: predicated region fallthrough
CT: control target
= control target key end

     0   :  { %6 = vsyncpa [#allocation3], 0  ;;  %s116_s0 = inlined_call_operand.hbm [shape: f32[8,256], index: 0, kind: input, shape index: {}, may-alias: {0,1}]   ;;  %s117_s1 = inlined_call_operand.hbm [shape: f32[8,256], index: 1, kind: output, shape index: {}, may-alias: {0,1}]  }
   0x1   :  { %7 = vsyncpa [#allocation4], 0  ;;  %s13_s8 = sshll.u32 %s116_s0, 4  ;;  %s98_s9 = smov [#allocation2]   ;;  %s14_s8 = int_to_ptr.hbm [resolvable:$true] %s13_s8 }
   0x2   :  { %s15_s10 = sshll.u32 %s98_s9, 4  ;;  %s16_s10 = int_to_ptr.vmem [resolvable:$true] %s15_s10 }
   0x3   :  { %18 = dma.hbm_to_vmem [thread:$0]  %s14_s8, 256, %s16_s10, [#allocation3]  }
   0x4   :  { %94 = dma.done.wait [#allocation3], 256  }
   0x5   :  { %95 = vsyncadd [#allocation3], 4294967040  ;;  %s99_s11 = smov [#allocation5]   ;;  %s34_s15 = sshll.u32 %s117_s1, 4  ;;  %v23_v0 = vld [vmem:[#allocation2] sm:$0xff]  ;;  %v24_v1 = vld [vmem:[#allocation2 + $0x8] sm:$0xff]  ;;  %s35_s15 = int_to_ptr.hbm [resolvable:$true] %s34_s15 }
   0x6   :  { %s32_s12 = sshll.u32 %s99_s11, 4  ;;  %25 = vst [vmem:[#allocation5] sm:$0xff] %v23_v0  ;;  %s33_s12 = int_to_ptr.vmem [resolvable:$true] %s32_s12 }
   0x7   :  { %26 = vst [vmem:[#allocation5 + $0x8] sm:$0xff] %v24_v1 }
   0x8   :  { %37 = dma.vmem_to_hbm [thread:$0]  %s33_s12, 256, %s35_s15, [#allocation4]  }
   0x9   :  { %96 = dma.done.wait [#allocation4], 256  }
   0xa   :  { %97 = vsyncadd [#allocation4], 4294967040 }
   0xb   :  { %42 = vsyncpa [#allocation3], 1 }
   0xc   :  { %43 = vsyncpa [#allocation4], 1 }

</bundles_post_ra>
